<compile_context>
chip_gen: v5e
topology: v5e:2x2
jax: 0.10.0
libtpu: 0.0.40
codegen_flags: <defaults>
</compile_context>

<pallas_src>
import math

import jax
import jax.numpy as jnp
from jax import lax
from jax.experimental import pallas as pl
from jax.experimental.pallas import tpu as pltpu

_LANE = 128
_SUBLANE = 8
_TARGET_TILE_BYTES = 4 << 20   # ~4 MiB per input tile (per pipeline buffer)
_CHUNK_ROWS = 512              # in-kernel f32 working-set chunk (256 KiB)


def _round_up(x: int, m: int) -> int:
    return ((x + m - 1) // m) * m


def _esr_kernel_factory(full_rows: int, tile_rows: int, steps: int,
                        need_mask: bool):
    """Build the kernel with all tiling parameters baked in statically."""
    # Static chunk decomposition of one (tile_rows, 128) block; chunk sizes are
    # always multiples of 8 (tile_rows is a multiple of the sublane multiple).
    chunk = min(_CHUNK_ROWS, tile_rows)
    chunk_starts = [(s, min(chunk, tile_rows - s))
                    for s in range(0, tile_rows, chunk)]

    def esr_kernel(o_ref, t_ref, acc_ref):
        c = pl.program_id(0)   # parallel split (maps to a TensorCore on v7x)
        i = pl.program_id(1)   # sequential tile index within the split

        @pl.when(i == 0)
        def _init():
            acc_ref[...] = jnp.zeros(acc_ref.shape, acc_ref.dtype)

        # Logical (unclamped) origin row of this block within the full array.
        row0 = (c * steps + i) * tile_rows

        def accumulate(masked: bool):
            for start, rows in chunk_starts:
                n_sub = rows // _SUBLANE
                t = t_ref[pl.ds(start, rows), :].astype(jnp.float32)
                o = o_ref[pl.ds(start, rows), :].astype(jnp.float32)
                if masked:
                    ridx = row0 + start + lax.broadcasted_iota(
                        jnp.int32, (rows, _LANE), 0)
                    valid = ridx < full_rows
                    t = jnp.where(valid, t, 0.0)
                    o = jnp.where(valid, o, 0.0)
                d = t - o
                # Fold (rows, 128) -> (n_sub, 8, 128) and sum the leading axis:
                # pure elementwise vreg adds into the resident output block.
                acc_ref[0, 0, :, :] = acc_ref[0, 0, :, :] + jnp.sum(
                    (d * d).reshape(n_sub, _SUBLANE, _LANE), axis=0)
                acc_ref[0, 1, :, :] = acc_ref[0, 1, :, :] + jnp.sum(
                    (t * t).reshape(n_sub, _SUBLANE, _LANE), axis=0)

        if need_mask:
            overhangs = (row0 + tile_rows) > full_rows

            @pl.when(overhangs)
            def _masked():
                accumulate(masked=True)

            @pl.when(jnp.logical_not(overhangs))
            def _fast():
                accumulate(masked=False)
        else:
            accumulate(masked=False)

    return esr_kernel


def _esr_partial_sums(o2d: jax.Array, t2d: jax.Array) -> jax.Array:
    """Pallas reduction over (full_rows, 128) inputs.

    Returns (num_splits, 2, 8, 128) f32 partial sums:
      [:, 0] = sum((target - output)^2),  [:, 1] = sum(target^2).
    """
    full_rows = o2d.shape[0]
    itemsize = jnp.dtype(o2d.dtype).itemsize
    # dtype-specific min sublane multiple (8 for f32, 16 for bf16, 32 for int8)
    sub_mult = max(_SUBLANE, 32 // itemsize)
    target_tile_rows = max(sub_mult, _TARGET_TILE_BYTES // (_LANE * itemsize))

    # Split the row range across two TensorCores (v7x) when there is more than
    # one target tile of work; on 1-TC chips the axis just runs serially.
    num_splits = 2 if full_rows > target_tile_rows else 1

    rows_per_core = _round_up(pl.cdiv(full_rows, num_splits), sub_mult)
    if rows_per_core <= target_tile_rows:
        steps = 1
        tile_rows = rows_per_core
    else:
        steps = pl.cdiv(rows_per_core, target_tile_rows)
        tile_rows = _round_up(pl.cdiv(rows_per_core, steps), sub_mult)

    total_blocks = pl.cdiv(full_rows, tile_rows)   # blocks with >= 1 valid row
    last_block = total_blocks - 1
    coverage_rows = num_splits * steps * tile_rows
    need_mask = coverage_rows > full_rows

    if num_splits * steps > total_blocks:
        # Rare slack case: clamp so padded/duplicated blocks never DMA past the
        # array; their contribution is zeroed by the in-kernel row mask.
        def index_map(c, i):
            return (jnp.minimum(c * steps + i, last_block), 0)
    else:
        def index_map(c, i):
            return (c * steps + i, 0)

    kernel = _esr_kernel_factory(full_rows, tile_rows, steps, need_mask)

    # VMEM budget: 2 inputs x 2 pipeline buffers x tile bytes, plus in-kernel
    # f32 chunk temporaries, plus headroom.  Capped at 40 MiB so it is safe on
    # v7x (64 MiB physical per core) as well as v5e/v6e (128 MiB).
    tile_bytes = tile_rows * _LANE * itemsize
    chunk_f32_bytes = min(_CHUNK_ROWS, tile_rows) * _LANE * 4
    vmem_need = 4 * tile_bytes + 8 * chunk_f32_bytes + (4 << 20)
    vmem_limit = int(min(40 << 20, max(16 << 20, vmem_need)))

    return pl.pallas_call(
        kernel,
        out_shape=jax.ShapeDtypeStruct(
            (num_splits, 2, _SUBLANE, _LANE), jnp.float32),
        grid_spec=pltpu.PrefetchScalarGridSpec(
            num_scalar_prefetch=0,
            grid=(num_splits, steps),
            in_specs=[
                pl.BlockSpec((tile_rows, _LANE), index_map),
                pl.BlockSpec((tile_rows, _LANE), index_map),
            ],
            out_specs=pl.BlockSpec(
                (1, 2, _SUBLANE, _LANE), lambda c, i: (c, 0, 0, 0)),
        ),
        compiler_params=pltpu.CompilerParams(
            dimension_semantics=("parallel", "arbitrary"),
            vmem_limit_bytes=vmem_limit,
        ),
    )(o2d, t2d)


def esr_loss(output: jax.Array, target: jax.Array,
             epsilon: float = 1e-5) -> jax.Array:
    assert output.shape == target.shape, "output/target shape mismatch"
    n_elems = int(math.prod(output.shape))
    assert n_elems > 0, "empty input"

    # Flatten in the ORIGINAL dtype (contiguous reshape is free).
    o_flat = output.reshape(-1)
    t_flat = target.reshape(-1)

    full_rows = n_elems // _LANE
    main_elems = full_rows * _LANE
    tail_elems = n_elems - main_elems

    # Ragged <128-element tail: tiny, computed with plain jnp instead of a
    # full-array jnp.pad copy of both inputs.
    if tail_elems:
        t_tail = t_flat[main_elems:].astype(jnp.float32)
        o_tail = o_flat[main_elems:].astype(jnp.float32)
        d_tail = t_tail - o_tail
        tail_err = jnp.sum(d_tail * d_tail)
        tail_sig = jnp.sum(t_tail * t_tail)
    else:
        tail_err = jnp.float32(0.0)
        tail_sig = jnp.float32(0.0)

    if full_rows == 0:
        err_sum = tail_err
        sig_sum = tail_sig
    else:
        if tail_elems:
            # TODO(synk): for ragged n_elems the prefix slice below may still
            # materialize a copy of the main part; the aligned (n % 128 == 0)
            # common case is copy-free.
            o2d = o_flat[:main_elems].reshape(full_rows, _LANE)
            t2d = t_flat[:main_elems].reshape(full_rows, _LANE)
        else:
            o2d = o_flat.reshape(full_rows, _LANE)
            t2d = t_flat.reshape(full_rows, _LANE)
        partials = _esr_partial_sums(o2d, t2d)
        err_sum = jnp.sum(partials[:, 0]) + tail_err
        sig_sum = jnp.sum(partials[:, 1]) + tail_sig

    inv_n = 1.0 / float(n_elems)
    return (err_sum * inv_n) / (sig_sum * inv_n + epsilon)


def esr_loss_ref(output, target, epsilon=1e-5):
    t = target.astype(jnp.float32)
    o = output.astype(jnp.float32)
    diff = t - o
    mse = jnp.mean(diff * diff)
    energy = jnp.mean(t * t) + epsilon
    return mse / energy


if __name__ == "__main__":
    key = jax.random.PRNGKey(0)
    keys = jax.random.split(key, 8)

    # 1) Small lane-aligned case consistent with the module: (B, C, H, W).
    x_shape = (2, 4, 16, 16)
    output = jax.random.normal(keys[0], x_shape, dtype=jnp.float32)
    target = jax.random.normal(keys[1], x_shape, dtype=jnp.float32)
    loss = esr_loss(output, target)
    jax.block_until_ready(loss)
    ref = esr_loss_ref(output, target)
    assert jnp.allclose(loss, ref, rtol=1e-5, atol=1e-6), (loss, ref)

    # 2) Ragged case: exercises the jnp tail path + in-kernel overhang masking.
    y_shape = (3, 5, 7, 11)
    output2 = jax.random.normal(keys[2], y_shape, dtype=jnp.float32)
    target2 = jax.random.normal(keys[3], y_shape, dtype=jnp.float32)
    loss2 = esr_loss(output2, target2)
    jax.block_until_ready(loss2)
    ref2 = esr_loss_ref(output2, target2)
    assert jnp.allclose(loss2, ref2, rtol=1e-5, atol=1e-6), (loss2, ref2)

    # 3) Waveform-sized case: exercises the 2-way "parallel" split + boundary
    #    mask gating (full_rows = 9375 is not a multiple of the per-core tile).
    z_shape = (2, 600000)
    output3 = jax.random.normal(keys[4], z_shape, dtype=jnp.float32)
    target3 = jax.random.normal(keys[5], z_shape, dtype=jnp.float32)
    loss3 = esr_loss(output3, target3)
    jax.block_until_ready(loss3)
    ref3 = esr_loss_ref(output3, target3)
    assert jnp.allclose(loss3, ref3, rtol=1e-4, atol=1e-6), (loss3, ref3)

    # 4) bf16 inputs: exercises the packed-dtype tile sizing + in-kernel cast.
    output4 = jax.random.normal(keys[6], x_shape, dtype=jnp.bfloat16)
    target4 = jax.random.normal(keys[7], x_shape, dtype=jnp.bfloat16)
    loss4 = esr_loss(output4, target4)
    jax.block_until_ready(loss4)
    ref4 = esr_loss_ref(output4, target4)
    assert jnp.allclose(loss4, ref4, rtol=1e-4, atol=1e-6), (loss4, ref4)

    print("KERNEL_OK")
</pallas_src>

<mosaic_0001>
module attributes {stable_mosaic.version = 11 : i64} {
  func.func @esr_kernel(%arg0: i32, %arg1: i32, %arg2: memref<16x128xf32, #tpu.memory_space<vmem>>, %arg3: memref<16x128xf32, #tpu.memory_space<vmem>>, %arg4: memref<1x2x8x128xf32, #tpu.memory_space<vmem>>) attributes {dimension_semantics = [#tpu.dimension_semantics<parallel>, #tpu.dimension_semantics<arbitrary>], iteration_bounds = array<i64: 1, 1>, scalar_prefetch = 0 : i64, scratch_operands = 0 : i64, tpu.core_type = #tpu.core_type<tc>, window_params = [{transform_indices = @transform_0, window_bounds = array<i64: 16, 128>}, {transform_indices = @transform_1, window_bounds = array<i64: 16, 128>}, {transform_indices = @transform_2, window_bounds = array<i64: 1, 2, 8, 128>}]} {
    %c0_i32 = arith.constant 0 : i32
    %0 = arith.cmpi eq, %arg1, %c0_i32 : i32
    %1 = arith.extui %0 : i1 to i32
    %c0_i32_0 = arith.constant 0 : i32
    %2 = arith.cmpi ne, %1, %c0_i32_0 : i32
    scf.if %2 {
      %cst_20 = arith.constant 0.000000e+00 : f32
      %24 = vector.broadcast %cst_20 : f32 to vector<1x2x8x128xf32>
      %c0_21 = arith.constant 0 : index
      %c0_22 = arith.constant 0 : index
      %c0_23 = arith.constant 0 : index
      %c0_24 = arith.constant 0 : index
      %25 = vector.load %arg4[%c0_21, %c0_22, %c0_23, %c0_24] : memref<1x2x8x128xf32, #tpu.memory_space<vmem>>, vector<1x2x8x128xf32>
      tpu.vector_store %arg4[%c0_21, %c0_22, %c0_23, %c0_24], %24 {strides = array<i32>} : memref<1x2x8x128xf32, #tpu.memory_space<vmem>>, vector<1x2x8x128xf32>,
    } else {
    }
    %c0 = arith.constant 0 : index
    %c0_1 = arith.constant 0 : index
    %3 = vector.load %arg3[%c0, %c0_1] : memref<16x128xf32, #tpu.memory_space<vmem>>, vector<16x128xf32>
    %c0_2 = arith.constant 0 : index
    %c0_3 = arith.constant 0 : index
    %4 = vector.load %arg2[%c0_2, %c0_3] : memref<16x128xf32, #tpu.memory_space<vmem>>, vector<16x128xf32>
    %5 = arith.subf %3, %4 : vector<16x128xf32>
    %c0_4 = arith.constant 0 : index
    %c0_5 = arith.constant 0 : index
    %c0_6 = arith.constant 0 : index
    %c0_7 = arith.constant 0 : index
    %6 = vector.load %arg4[%c0_4, %c0_5, %c0_6, %c0_7] : memref<1x2x8x128xf32, #tpu.memory_space<vmem>>, vector<1x1x8x128xf32>
    %7 = vector.shape_cast %6 : vector<1x1x8x128xf32> to vector<8x128xf32>
    %8 = arith.mulf %5, %5 : vector<16x128xf32>
    %9 = vector.shape_cast %8 : vector<16x128xf32> to vector<2x8x128xf32>
    %cst = arith.constant dense<0.000000e+00> : vector<8x128xf32>
    %10 = vector.multi_reduction <add>, %9, %cst [0] : vector<2x8x128xf32> to vector<8x128xf32>
    %11 = arith.addf %7, %10 : vector<8x128xf32>
    %c0_8 = arith.constant 0 : index
    %c0_9 = arith.constant 0 : index
    %c0_10 = arith.constant 0 : index
    %c0_11 = arith.constant 0 : index
    %12 = vector.load %arg4[%c0_8, %c0_9, %c0_10, %c0_11] : memref<1x2x8x128xf32, #tpu.memory_space<vmem>>, vector<1x1x8x128xf32>
    %13 = vector.shape_cast %12 : vector<1x1x8x128xf32> to vector<8x128xf32>
    %14 = vector.shape_cast %11 : vector<8x128xf32> to vector<1x1x8x128xf32>
    tpu.vector_store %arg4[%c0_8, %c0_9, %c0_10, %c0_11], %14 {strides = array<i32>} : memref<1x2x8x128xf32, #tpu.memory_space<vmem>>, vector<1x1x8x128xf32>,
    %c0_12 = arith.constant 0 : index
    %c1 = arith.constant 1 : index
    %c0_13 = arith.constant 0 : index
    %c0_14 = arith.constant 0 : index
    %15 = vector.load %arg4[%c0_12, %c1, %c0_13, %c0_14] : memref<1x2x8x128xf32, #tpu.memory_space<vmem>>, vector<1x1x8x128xf32>
    %16 = vector.shape_cast %15 : vector<1x1x8x128xf32> to vector<8x128xf32>
    %17 = arith.mulf %3, %3 : vector<16x128xf32>
    %18 = vector.shape_cast %17 : vector<16x128xf32> to vector<2x8x128xf32>
    %cst_15 = arith.constant dense<0.000000e+00> : vector<8x128xf32>
    %19 = vector.multi_reduction <add>, %18, %cst_15 [0] : vector<2x8x128xf32> to vector<8x128xf32>
    %20 = arith.addf %16, %19 : vector<8x128xf32>
    %c0_16 = arith.constant 0 : index
    %c1_17 = arith.constant 1 : index
    %c0_18 = arith.constant 0 : index
    %c0_19 = arith.constant 0 : index
    %21 = vector.load %arg4[%c0_16, %c1_17, %c0_18, %c0_19] : memref<1x2x8x128xf32, #tpu.memory_space<vmem>>, vector<1x1x8x128xf32>
    %22 = vector.shape_cast %21 : vector<1x1x8x128xf32> to vector<8x128xf32>
    %23 = vector.shape_cast %20 : vector<8x128xf32> to vector<1x1x8x128xf32>
    tpu.vector_store %arg4[%c0_16, %c1_17, %c0_18, %c0_19], %23 {strides = array<i32>} : memref<1x2x8x128xf32, #tpu.memory_space<vmem>>, vector<1x1x8x128xf32>,
    return
  }
  func.func @transform_0(%arg0: i32, %arg1: i32) -> (i32, i32) {
    %c1_i32 = arith.constant 1 : i32
    %0 = arith.muli %arg0, %c1_i32 : i32
    %1 = arith.addi %0, %arg1 : i32
    %c0_i32 = arith.constant 0 : i32
    %c0_i32_0 = arith.constant 0 : i32
    return %1, %c0_i32 : i32, i32
  }
  func.func @transform_1(%arg0: i32, %arg1: i32) -> (i32, i32) {
    %c1_i32 = arith.constant 1 : i32
    %0 = arith.muli %arg0, %c1_i32 : i32
    %1 = arith.addi %0, %arg1 : i32
    %c0_i32 = arith.constant 0 : i32
    %c0_i32_0 = arith.constant 0 : i32
    return %1, %c0_i32 : i32, i32
  }
  func.func @transform_2(%arg0: i32, %arg1: i32) -> (i32, i32, i32, i32) {
    %c0_i32 = arith.constant 0 : i32
    %c0_i32_0 = arith.constant 0 : i32
    %c0_i32_1 = arith.constant 0 : i32
    %c0_i32_2 = arith.constant 0 : i32
    return %arg0, %c0_i32, %c0_i32_0, %c0_i32_1 : i32, i32, i32, i32
  }
}

</mosaic_0001>

<bundles_post_ra>
// kernel: tpu_custom_call.1
= control target key start
LH: loop header
LB: loop body
LE: loop exit
PB: predicated region body
PF: predicated region fallthrough
CT: control target
= control target key end

     0   :  { %7 = vsyncpa [#allocation3], 0  ;;  %s223_s0 = inlined_call_operand.hbm [shape: f32[16,128], index: 0, kind: input, shape index: {}]   ;;  %s224_s1 = inlined_call_operand.hbm [shape: f32[16,128], index: 1, kind: input, shape index: {}]   ;;  %s225_s2 = inlined_call_operand.hbm [shape: f32[1,2,8,128], index: 2, kind: output, shape index: {}]  }
   0x1   :  { %8 = vsyncpa [#allocation6], 0 }
   0x2   :  { %9 = vsyncpa [#allocation4], 0  ;;  %s18_s11 = sshll.u32 %s223_s0, 4  ;;  %s185_s12 = smov [#allocation2]   ;;  %s19_s11 = int_to_ptr.hbm [resolvable:$true] %s18_s11 }
   0x3   :  { %s20_s13 = sshll.u32 %s185_s12, 4  ;;  %s35_s16 = sshll.u32 %s224_s1, 4  ;;  %s21_s13 = int_to_ptr.vmem [resolvable:$true] %s20_s13  ;;  %s36_s16 = int_to_ptr.hbm [resolvable:$true] %s35_s16 }
   0x4   :  { %s186_s17 = smov 128   ;;  %s187_s18 = smov 8  }
   0x5   :  { %26 = dma.hbm_to_vmem [thread:$0]  %s19_s11, 256, %s21_s13, [#allocation3], %s186_s17, %s186_s17, %s187_s18  }
   0x6   :  { %s188_s19 = smov [#allocation5]  }
   0x7   :  { %s37_s20 = sshll.u32 %s188_s19, 4  ;;  %s38_s20 = int_to_ptr.vmem [resolvable:$true] %s37_s20 }
   0x8   :  { %43 = dma.hbm_to_vmem [thread:$0]  %s36_s16, 256, %s38_s20, [#allocation6], %s186_s17, %s186_s17, %s187_s18  }
   0x9   :  { %179 = dma.done.wait [#allocation3], 256  }
   0xa   :  { %180 = vsyncadd [#allocation3], 4294967040 }
   0xb   :  { %181 = dma.done.wait [#allocation6], 256  }
   0xc   :  { %182 = vsyncadd [#allocation6], 4294967040  ;;  %v62_v0 = vld [vmem:[#allocation5] sm:$0xff]  ;;  %v63_v1 = vld [vmem:[#allocation5 + $0x8] sm:$0xff]  ;;  %s189_s0 = smov [#allocation7]   ;;  %s87_s23 = sshll.u32 %s225_s2, 4  ;;  %s88_s23 = int_to_ptr.hbm [resolvable:$true] %s87_s23 }
   0xd   :  { %v64_v2 = vld [vmem:[#allocation2] sm:$0xff]  ;;  %v65_v3 = vld [vmem:[#allocation2 + $0x8] sm:$0xff]  ;;  %v76_v5 = vmul.f32 %v62_v0, %v62_v0  ;;  %v77_v6 = vmul.f32 %v63_v1, %v63_v1  ;;  %s85_s1 = sshll.u32 %s189_s0, 4  ;;  %s86_s1 = int_to_ptr.vmem [resolvable:$true] %s85_s1 }
   0xe   :  { %v66_v4 = vsub.f32 %v62_v0, %v64_v2  ;;  %v67_v7 = vsub.f32 %v63_v1, %v65_v3 }
   0xf   :  { %v78_v9 = vadd.f32 %v77_v6, %v76_v5 }
  0x10   :  { %v69_v8 = vmul.f32 %v66_v4, %v66_v4  ;;  %v70_v10 = vmul.f32 %v67_v7, %v67_v7 }
  0x11   :  { %80 = vst [vmem:[#allocation7 + $0x8] sm:$0xff] %v78_v9 }
  0x12   :  { %v71_v11 = vadd.f32 %v70_v10, %v69_v8 }
  0x14   :  { %73 = vst [vmem:[#allocation7] sm:$0xff] %v71_v11 }
  0x15   :  { %93 = dma.vmem_to_hbm [thread:$0]  %s86_s1, 256, %s88_s23, [#allocation4], %s186_s17, %s186_s17, %s187_s18  }
  0x16   :  { %183 = dma.done.wait [#allocation4], 256  }
  0x17   :  { %184 = vsyncadd [#allocation4], 4294967040 }
  0x18   :  { %98 = vsyncpa [#allocation3], 1 }
  0x19   :  { %99 = vsyncpa [#allocation6], 1 }
  0x1a   :  { %100 = vsyncpa [#allocation4], 1 }

</bundles_post_ra>
